<compile_context>
chip_gen: v6e
topology: v6e:2x2x1
jax: 0.10.0
libtpu: 0.0.40
codegen_flags: <defaults>
</compile_context>

<pallas_src>
import functools

import jax
import jax.numpy as jnp
from jax.experimental import pallas as pl
from jax.experimental.pallas import tpu as pltpu


# ------------------------------- helpers ------------------------------------
def _round_up(x, m):
    return (x + m - 1) // m * m


def _batch_tiling(B):
    """Batch padding + recurrence batch tile.

    >=2 tiles when the batch allows (feeds both v7x TensorCores), capped at
    128 rows per tile (fills the MXU M dimension on all generations)."""
    b8 = _round_up(B, 8)
    if b8 <= 8:
        tb = b8
    else:
        tb = min(128, _round_up((b8 + 1) // 2, 8))
    b_pad = _round_up(b8, tb)
    return b_pad, tb


# --------------------- generic tiled matmul + bias kernel --------------------
def _matmul_bias_kernel(x_ref, w_ref, b_ref, o_ref, *, relu):
    acc = jnp.dot(x_ref[...], w_ref[...],
                  preferred_element_type=jnp.float32) + b_ref[...]
    if relu:
        acc = jnp.maximum(acc, 0.0)
    o_ref[...] = acc.astype(o_ref.dtype)


def matmul_bias(x_bf16, w_t_bf16, b_row_f32, *, relu=False,
                out_dtype=jnp.float32):
    """(M, K)bf16 @ (K, N)bf16 + (1, N)f32 -> (M, N)out_dtype.

    Grid is (N-tiles, M-tiles): the weight block only changes on the OUTER
    axis, so it stays resident in VMEM while activation tiles stream."""
    M, K = x_bf16.shape
    Kw, N = w_t_bf16.shape
    assert K == Kw and K % 128 == 0 and N % 128 == 0

    if N % 512 == 0:
        tn = 512
    elif N % 256 == 0:
        tn = 256
    else:
        tn = 128
    m_pad = _round_up(M, 8)
    tm = min(256, m_pad)
    m_pad = _round_up(m_pad, tm)
    if m_pad != M:
        x_bf16 = jnp.pad(x_bf16, ((0, m_pad - M), (0, 0)))

    out_itemsize = jnp.dtype(out_dtype).itemsize
    cost = pl.CostEstimate(
        flops=2 * m_pad * K * N,
        transcendentals=0,
        bytes_accessed=(m_pad * K + K * N) * 2 + N * 4 + m_pad * N * out_itemsize)

    out = pl.pallas_call(
        functools.partial(_matmul_bias_kernel, relu=relu),
        out_shape=jax.ShapeDtypeStruct((m_pad, N), out_dtype),
        grid_spec=pltpu.PrefetchScalarGridSpec(
            num_scalar_prefetch=0,
            grid=(N // tn, m_pad // tm),          # weight axis OUTER
            in_specs=[
                pl.BlockSpec((tm, K), lambda j, i: (i, 0)),
                pl.BlockSpec((K, tn), lambda j, i: (0, j)),   # resident on inner axis
                pl.BlockSpec((1, tn), lambda j, i: (0, j)),
            ],
            out_specs=pl.BlockSpec((tm, tn), lambda j, i: (i, j)),
        ),
        compiler_params=pltpu.CompilerParams(
            dimension_semantics=("parallel", "parallel"),
            vmem_limit_bytes=48 * 1024 * 1024),
        cost_estimate=cost,
    )(x_bf16, w_t_bf16, b_row_f32)
    return out[:M] if m_pad != M else out


# --------------------- encoder global-average-pool kernel --------------------
def _pool_kernel(x_ref, o_ref, acc_ref, *, inv_hw):
    # x: (tb, C, ts) bf16, channel-first so the big spatial axis is lane-dense.
    @pl.when(pl.program_id(1) == 0)
    def _():
        acc_ref[...] = jnp.zeros_like(acc_ref)

    acc_ref[...] += jnp.sum(x_ref[...].astype(jnp.float32), axis=-1)

    @pl.when(pl.program_id(1) == pl.num_programs(1) - 1)
    def _():
        o_ref[...] = (acc_ref[...] * inv_hw).astype(o_ref.dtype)


def global_avg_pool(images_nchw, b_pad):
    """NCHW images -> (b_pad, C) bf16 spatial mean (f32 accumulation)."""
    B, C, H, W = images_nchw.shape
    hw = H * W
    if hw <= 2048:
        ts = _round_up(hw, 128)
        hw_pad = ts
    else:
        ts = 2048
        hw_pad = _round_up(hw, ts)

    # cast to bf16 BEFORE the DMA; channels stay unpadded (padding happens
    # only on the tiny pooled result).  Zero spatial padding is sum-inert.
    x = images_nchw.reshape(B, C, hw).astype(jnp.bfloat16)
    x = jnp.pad(x, ((0, b_pad - B), (0, 0), (0, hw_pad - hw)))

    tb = 8
    return pl.pallas_call(
        functools.partial(_pool_kernel, inv_hw=1.0 / hw),
        out_shape=jax.ShapeDtypeStruct((b_pad, C), jnp.bfloat16),
        grid_spec=pltpu.PrefetchScalarGridSpec(
            num_scalar_prefetch=0,
            grid=(b_pad // tb, hw_pad // ts),
            in_specs=[pl.BlockSpec((tb, C, ts), lambda i, s: (i, 0, s))],
            out_specs=pl.BlockSpec((tb, C), lambda i, s: (i, 0)),
            scratch_shapes=[pltpu.VMEM((tb, C), jnp.float32)],
        ),
        compiler_params=pltpu.CompilerParams(
            dimension_semantics=("parallel", "arbitrary")),
    )(x)


# --------------------------- LSTM recurrence kernel --------------------------
def _lstm_rec_kernel(gates_ref, whh_ref, out_ref, h_scr, c_scr):
    # gates_ref: (T, tb, 4*Hp) bf16 precomputed  x@W_ih^T + b_ih + b_hh
    # whh_ref  : (Hp, 4*Hp)    bf16 pre-transposed recurrent weight
    seq_len = gates_ref.shape[0]
    hdim = whh_ref.shape[0]

    h_scr[...] = jnp.zeros_like(h_scr)
    c_scr[...] = jnp.zeros_like(c_scr)
    w = whh_ref[...]                      # load recurrent weight once

    def step(t, carry):
        h = h_scr[...]
        c = c_scr[...]
        g = gates_ref[t].astype(jnp.float32) + jnp.dot(
            h.astype(jnp.bfloat16), w, preferred_element_type=jnp.float32)
        # PyTorch gate order: i, f, g, o — slices are 128-aligned (Hp % 128 == 0)
        i_g = jax.nn.sigmoid(g[:, 0 * hdim:1 * hdim])
        f_g = jax.nn.sigmoid(g[:, 1 * hdim:2 * hdim])
        g_g = jnp.tanh(g[:, 2 * hdim:3 * hdim])
        o_g = jax.nn.sigmoid(g[:, 3 * hdim:4 * hdim])
        c_new = f_g * c + i_g * g_g
        h_new = o_g * jnp.tanh(c_new)
        h_scr[...] = h_new
        c_scr[...] = c_new
        out_ref[t] = h_new.astype(out_ref.dtype)
        return carry

    jax.lax.fori_loop(0, seq_len, step, 0)


def lstm_recurrence(gates_seq, w_hh_t, tb):
    T, b_pad, g4 = gates_seq.shape
    h_pad = w_hh_t.shape[0]
    assert b_pad % tb == 0
    cost = pl.CostEstimate(
        flops=2 * T * b_pad * h_pad * g4,
        transcendentals=T * b_pad * (g4 + h_pad),
        bytes_accessed=T * b_pad * g4 * 2 + h_pad * g4 * 2 + T * b_pad * h_pad * 2)
    return pl.pallas_call(
        _lstm_rec_kernel,
        out_shape=jax.ShapeDtypeStruct((T, b_pad, h_pad), jnp.bfloat16),
        grid_spec=pltpu.PrefetchScalarGridSpec(
            num_scalar_prefetch=0,
            grid=(b_pad // tb,),
            in_specs=[
                pl.BlockSpec((T, tb, g4), lambda b: (0, b, 0)),
                pl.BlockSpec((h_pad, g4), lambda b: (0, 0)),
            ],
            out_specs=pl.BlockSpec((T, tb, h_pad), lambda b: (0, b, 0)),
            scratch_shapes=[pltpu.VMEM((tb, h_pad), jnp.float32),
                            pltpu.VMEM((tb, h_pad), jnp.float32)],
        ),
        compiler_params=pltpu.CompilerParams(
            dimension_semantics=("parallel",),    # batch tiles independent
            vmem_limit_bytes=48 * 1024 * 1024),
        cost_estimate=cost,
    )(gates_seq, w_hh_t)


# ----------------------------- parameter plumbing ----------------------------
def init_params(key, *, in_features, embed_size, hidden_size, vocab_size,
                num_layers):
    n_keys = 5 + 4 * num_layers
    ks = list(jax.random.split(key, n_keys))
    p = {}
    p["enc_w"] = 0.1 * jax.random.normal(ks.pop(), (embed_size, in_features), jnp.float32)
    p["enc_b"] = 0.1 * jax.random.normal(ks.pop(), (embed_size,), jnp.float32)
    p["embed"] = 0.1 * jax.random.normal(ks.pop(), (vocab_size, embed_size), jnp.float32)
    for l in range(num_layers):
        in_dim = embed_size if l == 0 else hidden_size
        p[f"w_ih_{l}"] = 0.1 * jax.random.normal(ks.pop(), (4 * hidden_size, in_dim), jnp.float32)
        p[f"w_hh_{l}"] = 0.1 * jax.random.normal(ks.pop(), (4 * hidden_size, hidden_size), jnp.float32)
        p[f"b_ih_{l}"] = 0.1 * jax.random.normal(ks.pop(), (4 * hidden_size,), jnp.float32)
        p[f"b_hh_{l}"] = 0.1 * jax.random.normal(ks.pop(), (4 * hidden_size,), jnp.float32)
    p["lin_w"] = 0.1 * jax.random.normal(ks.pop(), (vocab_size, hidden_size), jnp.float32)
    p["lin_b"] = 0.1 * jax.random.normal(ks.pop(), (vocab_size,), jnp.float32)
    return p


def _pad_gate_weight(w, hidden, h_pad, in_dim, in_pad):
    # (4*hidden, in_dim) -> per-gate padded -> transposed (in_pad, 4*h_pad) bf16
    w4 = w.reshape(4, hidden, in_dim)
    w4 = jnp.pad(w4, ((0, 0), (0, h_pad - hidden), (0, in_pad - in_dim)))
    return jnp.transpose(w4.reshape(4 * h_pad, in_pad)).astype(jnp.bfloat16)


def _pad_gate_bias(b_ih, b_hh, hidden, h_pad):
    b = (b_ih + b_hh).reshape(4, hidden)          # pre-sum biases once
    b = jnp.pad(b, ((0, 0), (0, h_pad - hidden)))
    return b.reshape(1, 4 * h_pad).astype(jnp.float32)


def prepare_params(p, *, in_features, embed_size, hidden_size, vocab_size,
                   num_layers):
    """One-time host-side layout plumbing: pad to (8,128), transpose, cast."""
    c_pad = _round_up(in_features, 128)
    e_pad = _round_up(embed_size, 128)
    h_pad = _round_up(hidden_size, 128)
    v_pad = _round_up(vocab_size, 128)
    q = {"c_pad": c_pad, "e_pad": e_pad, "h_pad": h_pad, "v_pad": v_pad}

    w = jnp.pad(p["enc_w"], ((0, e_pad - embed_size), (0, c_pad - in_features)))
    q["enc_w_t"] = jnp.transpose(w).astype(jnp.bfloat16)            # (c_pad, e_pad)
    q["enc_b"] = jnp.pad(p["enc_b"], (0, e_pad - embed_size)).reshape(1, e_pad)

    q["embed"] = jnp.pad(p["embed"],
                         ((0, 0), (0, e_pad - embed_size))).astype(jnp.bfloat16)

    for l in range(num_layers):
        in_dim = embed_size if l == 0 else hidden_size
        in_pad = e_pad if l == 0 else h_pad
        q[f"w_ih_t_{l}"] = _pad_gate_weight(p[f"w_ih_{l}"], hidden_size, h_pad,
                                            in_dim, in_pad)
        q[f"w_hh_t_{l}"] = _pad_gate_weight(p[f"w_hh_{l}"], hidden_size, h_pad,
                                            hidden_size, h_pad)
        q[f"b_{l}"] = _pad_gate_bias(p[f"b_ih_{l}"], p[f"b_hh_{l}"],
                                     hidden_size, h_pad)

    wl = jnp.pad(p["lin_w"], ((0, v_pad - vocab_size), (0, h_pad - hidden_size)))
    q["lin_w_t"] = jnp.transpose(wl).astype(jnp.bfloat16)            # (h_pad, v_pad)
    q["lin_b"] = jnp.pad(p["lin_b"], (0, v_pad - vocab_size)).reshape(1, v_pad)
    return q


# ------------------------------ model forward --------------------------------
def encoder_cnn_forward(prep, images, b_pad):
    """EncoderCNN.forward.

    TODO(synk): Inception-V3 backbone stubbed by a global-average-pool feeding
    the replaced fc head (Linear -> ReLU -> Dropout[eval=identity])."""
    C = images.shape[1]
    pooled = global_avg_pool(images, b_pad)                           # (b_pad, C) bf16
    pooled = jnp.pad(pooled, ((0, 0), (0, prep["c_pad"] - C)))        # pad channels AFTER pooling
    return matmul_bias(pooled, prep["enc_w_t"], prep["enc_b"],
                       relu=True, out_dtype=jnp.bfloat16)             # (b_pad, e_pad) bf16


def cnn_to_rnn_forward(prep, images, captions, *, num_layers, vocab_size):
    B = images.shape[0]
    T = captions.shape[0]
    b_pad, tb = _batch_tiling(B)
    tp1 = T + 1

    # EncoderCNN
    features = encoder_cnn_forward(prep, images, b_pad)               # bf16

    # DecoderRNN: embeddings (plain-JAX gather, bf16 table) + Dropout[id]
    emb = prep["embed"][captions]                                     # (T, B, e_pad) bf16
    emb = jnp.pad(emb, ((0, 0), (0, b_pad - B), (0, 0)))
    x = jnp.concatenate([features[None], emb], axis=0)                # (T+1, b_pad, e_pad) bf16

    for l in range(num_layers):
        in_pad = x.shape[-1]
        # hoisted input projection for ALL timesteps in one MXU matmul (bf16 out)
        gates = matmul_bias(x.reshape(tp1 * b_pad, in_pad),
                            prep[f"w_ih_t_{l}"], prep[f"b_{l}"],
                            out_dtype=jnp.bfloat16)
        gates = gates.reshape(tp1, b_pad, -1)
        # sequential part: only h @ W_hh^T per step, time loop inside kernel
        x = lstm_recurrence(gates, prep[f"w_hh_t_{l}"], tb)           # (T+1, b_pad, h_pad) bf16

    logits = matmul_bias(x.reshape(tp1 * b_pad, prep["h_pad"]),
                         prep["lin_w_t"], prep["lin_b"],
                         out_dtype=jnp.float32)
    logits = logits.reshape(tp1, b_pad, -1)
    return logits[:, :B, :vocab_size]                                 # (T+1, B, vocab)


if __name__ == "__main__":
    # Small, module-consistent shapes
    B, C, Himg, Wimg = 2, 4, 16, 16        # images NCHW
    T = 8                                  # caption length (seq-first)
    EMBED, HIDDEN, VOCAB, NUM_LAYERS = 32, 32, 64, 2

    key = jax.random.PRNGKey(0)
    k_img, k_cap, k_par = jax.random.split(key, 3)

    images = jax.random.normal(k_img, (B, C, Himg, Wimg), jnp.float32)
    captions = jax.random.randint(k_cap, (T, B), 0, VOCAB, jnp.int32)

    params = init_params(k_par, in_features=C, embed_size=EMBED,
                         hidden_size=HIDDEN, vocab_size=VOCAB,
                         num_layers=NUM_LAYERS)
    prep = prepare_params(params, in_features=C, embed_size=EMBED,
                          hidden_size=HIDDEN, vocab_size=VOCAB,
                          num_layers=NUM_LAYERS)

    # EncoderCNN spec output
    b_pad, _ = _batch_tiling(B)
    feats = encoder_cnn_forward(prep, images, b_pad)[:B, :EMBED].astype(jnp.float32)
    feats = jax.block_until_ready(feats)
    assert feats.shape == (B, EMBED), feats.shape
    assert bool(jnp.all(jnp.isfinite(feats)))

    # Full captioning forward (encoder + decoder)
    out = cnn_to_rnn_forward(prep, images, captions,
                             num_layers=NUM_LAYERS, vocab_size=VOCAB)
    out = jax.block_until_ready(out)
    assert out.shape == (T + 1, B, VOCAB), out.shape
    assert bool(jnp.all(jnp.isfinite(out)))
    print("KERNEL_OK")
</pallas_src>

<mosaic_0001>
module attributes {stable_mosaic.version = 11 : i64} {
  func.func @_pool_kernel(%arg0: i32, %arg1: i32, %arg2: memref<8x4x256xbf16, #tpu.memory_space<vmem>>, %arg3: memref<8x4xbf16, #tpu.memory_space<vmem>>, %arg4: memref<8x4xf32, #tpu.memory_space<vmem>>) attributes {dimension_semantics = [#tpu.dimension_semantics<parallel>, #tpu.dimension_semantics<arbitrary>], iteration_bounds = array<i64: 1, 1>, scalar_prefetch = 0 : i64, scratch_operands = 1 : i64, tpu.core_type = #tpu.core_type<tc>, window_params = [{transform_indices = @transform_0, window_bounds = array<i64: 8, 4, 256>}, {transform_indices = @transform_1, window_bounds = array<i64: 8, 4>}]} {
    %c0_i32 = arith.constant 0 : i32
    %0 = arith.cmpi eq, %arg1, %c0_i32 : i32
    %1 = arith.extui %0 : i1 to i32
    %c0_i32_0 = arith.constant 0 : i32
    %2 = arith.cmpi ne, %1, %c0_i32_0 : i32
    scf.if %2 {
      %cst_9 = arith.constant 0.000000e+00 : f32
      %12 = vector.broadcast %cst_9 : f32 to vector<8x4xf32>
      %c0_10 = arith.constant 0 : index
      %c0_11 = arith.constant 0 : index
      %13 = vector.load %arg4[%c0_10, %c0_11] : memref<8x4xf32, #tpu.memory_space<vmem>>, vector<8x4xf32>
      tpu.vector_store %arg4[%c0_10, %c0_11], %12 {strides = array<i32>} : memref<8x4xf32, #tpu.memory_space<vmem>>, vector<8x4xf32>,
    } else {
    }
    %c0 = arith.constant 0 : index
    %c0_1 = arith.constant 0 : index
    %3 = vector.load %arg4[%c0, %c0_1] : memref<8x4xf32, #tpu.memory_space<vmem>>, vector<8x4xf32>
    %c0_2 = arith.constant 0 : index
    %c0_3 = arith.constant 0 : index
    %c0_4 = arith.constant 0 : index
    %4 = vector.load %arg2[%c0_2, %c0_3, %c0_4] : memref<8x4x256xbf16, #tpu.memory_space<vmem>>, vector<8x4x256xbf16>
    %5 = arith.extf %4 : vector<8x4x256xbf16> to vector<8x4x256xf32>
    %cst = arith.constant dense<0.000000e+00> : vector<8x4xf32>
    %6 = vector.multi_reduction <add>, %5, %cst [2] : vector<8x4x256xf32> to vector<8x4xf32>
    %7 = arith.addf %3, %6 : vector<8x4xf32>
    %c0_5 = arith.constant 0 : index
    %c0_6 = arith.constant 0 : index
    %8 = vector.load %arg4[%c0_5, %c0_6] : memref<8x4xf32, #tpu.memory_space<vmem>>, vector<8x4xf32>
    tpu.vector_store %arg4[%c0_5, %c0_6], %7 {strides = array<i32>} : memref<8x4xf32, #tpu.memory_space<vmem>>, vector<8x4xf32>,
    %c0_i32_7 = arith.constant 0 : i32
    %9 = arith.cmpi eq, %arg1, %c0_i32_7 : i32
    %10 = arith.extui %9 : i1 to i32
    %c0_i32_8 = arith.constant 0 : i32
    %11 = arith.cmpi ne, %10, %c0_i32_8 : i32
    scf.if %11 {
      %c0_9 = arith.constant 0 : index
      %c0_10 = arith.constant 0 : index
      %12 = vector.load %arg4[%c0_9, %c0_10] : memref<8x4xf32, #tpu.memory_space<vmem>>, vector<8x4xf32>
      %cst_11 = arith.constant 3.906250e-03 : f32
      %13 = vector.broadcast %cst_11 : f32 to vector<8x4xf32>
      %14 = arith.mulf %12, %13 : vector<8x4xf32>
      %15 = arith.truncf %14 : vector<8x4xf32> to vector<8x4xbf16>
      %c0_12 = arith.constant 0 : index
      %c0_13 = arith.constant 0 : index
      %16 = vector.load %arg3[%c0_12, %c0_13] : memref<8x4xbf16, #tpu.memory_space<vmem>>, vector<8x4xbf16>
      tpu.vector_store %arg3[%c0_12, %c0_13], %15 {strides = array<i32>} : memref<8x4xbf16, #tpu.memory_space<vmem>>, vector<8x4xbf16>,
    } else {
    }
    return
  }
  func.func @transform_0(%arg0: i32, %arg1: i32) -> (i32, i32, i32) {
    %c0_i32 = arith.constant 0 : i32
    %c0_i32_0 = arith.constant 0 : i32
    return %arg0, %c0_i32, %arg1 : i32, i32, i32
  }
  func.func @transform_1(%arg0: i32, %arg1: i32) -> (i32, i32) {
    %c0_i32 = arith.constant 0 : i32
    %c0_i32_0 = arith.constant 0 : i32
    return %arg0, %c0_i32 : i32, i32
  }
}

</mosaic_0001>

<bundles_post_ra>
// kernel: tpu_custom_call.1
= control target key start
LH: loop header
LB: loop body
LE: loop exit
PB: predicated region body
PF: predicated region fallthrough
CT: control target
= control target key end

     0   :  { %6 = vsyncpa [#allocation4], 0  ;;  %s228_s6 = smov [#allocation3]   ;;  %s266_s0 = inlined_call_operand.hbm [shape: bf16[8,4,256], index: 0, kind: input, shape index: {}]   ;;  %s267_s1 = inlined_call_operand.vmem [shape: bf16[8,4], index: 1, kind: output, shape index: {}]  }
   0x1   :  { %s12_s7 = sshll.u32 %s228_s6, 4  ;;  %s13_s7 = int_to_ptr.vmem [resolvable:$true] %s12_s7 }
   0x2   :  { %s214_s8 = scalar_lea.vmem %s13_s7, 512  ;;  %p219_p1 = scmp.lt.s32.totalorder %s13_s7, %s13_s7 }
   0x3   :  { %p215_p0 = scmp.ne.s32.totalorder %s13_s7, %s214_s8  ;;  %p220_p2 = scmp.lt.s32.totalorder %s214_s8, %s214_s8 }
   0x5   :  { %p221_p3 = por %p220_p2, %p219_p1 }
   0x7   :  { %p222_p4 = pnand %p221_p3, %p215_p0 }
   0x9   :  { %225 = shalt.err (!%p222_p4)
}
   0xa   :  { %s229_s9 = smov 64   ;;  %s230_s10 = smov 4  }
   0xb   :  { %18 = dma.hbm_to_vmem [thread:$0]  %s266_s0, 512, %s13_s7, [#allocation4], %s229_s9, %s229_s9, %s230_s10  }
   0xc   :  { %226 = dma.done.wait [#allocation4], 512  }
   0xd   :  { %227 = vsyncadd [#allocation4], 4294966784  ;;  %v184_v0 = vld [vmem:[#allocation3] sm:$0xff]   ;;  %vm69_vm0 = vcmask 1043456   ;;  %v199_v1 = vld [vmem:[#allocation3 + $0x8] sm:$0xff]   ;;  %vm26_vm1 = vcmask 31744   ;;  %v118_v45 = vlaneseq }
   0xe   :  { %v200_v2 = vld [vmem:[#allocation3 + $0x10] sm:$0xff]   ;;  %v185_v3 = vunpack.c.l.bf16 %v184_v0  ;;  %v189_v4 = vunpack.c.l.bf16 %v199_v1  ;;  %v186_v5 = vunpack.c.h.bf16 %v184_v0  ;;  %v190_v6 = vunpack.c.h.bf16 %v199_v1  ;;  %v201_v7 = vld [vmem:[#allocation3 + $0x18] sm:$0xff]  }
   0xf   :  { %v193_v8 = vunpack.c.l.bf16 %v200_v2  ;;  %v194_v9 = vunpack.c.h.bf16 %v200_v2  ;;  %v197_v10 = vunpack.c.l.bf16 %v201_v7  ;;  %v198_v18 = vunpack.c.h.bf16 %v201_v7 }
  0x10   :  { %v53_v11 = vcombine.high %v185_v3, %v185_v3  ;;  %v70_v12 = vsel %vm69_vm0, %v185_v3, 0.0  ;;  %v55_v13 = vcombine.high %v189_v4, %v189_v4  ;;  %v80_v14 = vsel %vm69_vm0, %v189_v4, 0.0 }
  0x11   :  { %v54_v15 = vcombine.high %v186_v5, %v186_v5  ;;  %v75_v16 = vsel %vm69_vm0, %v186_v5, 0.0  ;;  %v56_v17 = vcombine.high %v190_v6, %v190_v6  ;;  %v85_v21 = vsel %vm69_vm0, %v190_v6, 0.0 }
  0x12   :  { %v71_v19 = vsel %vm69_vm0, %v53_v11, 0.0  ;;  %v81_v20 = vsel %vm69_vm0, %v55_v13, 0.0  ;;  %v57_v22 = vcombine.high %v193_v8, %v193_v8  ;;  %v58_v27 = vcombine.high %v194_v9, %v194_v9 }
  0x13   :  { %v72_v23 = vadd.f32 %v71_v19, %v70_v12  ;;  %v82_v24 = vadd.f32 %v81_v20, %v80_v14  ;;  %v76_v25 = vsel %vm69_vm0, %v54_v15, 0.0  ;;  %v86_v26 = vsel %vm69_vm0, %v56_v17, 0.0 }
  0x14   :  { %v77_v28 = vadd.f32 %v76_v25, %v75_v16  ;;  %v87_v29 = vadd.f32 %v86_v26, %v85_v21  ;;  %v90_v30 = vsel %vm69_vm0, %v193_v8, 0.0  ;;  %v91_v31 = vsel %vm69_vm0, %v57_v22, 0.0 }
  0x15   :  { %73 = vadd.xlane.f32.xlu0 %v72_v23  ;;  %83 = vadd.xlane.f32.xlu1 %v82_v24  ;;  %v95_v32 = vsel %vm69_vm0, %v194_v9, 0.0  ;;  %v96_v33 = vsel %vm69_vm0, %v58_v27, 0.0  ;;  %v59_v34 = vcombine.high %v197_v10, %v197_v10  ;;  %v60_v35 = vcombine.high %v198_v18, %v198_v18 }
  0x16   :  { %v92_v36 = vadd.f32 %v91_v31, %v90_v30  ;;  %v97_v37 = vadd.f32 %v96_v33, %v95_v32  ;;  %v100_v38 = vsel %vm69_vm0, %v197_v10, 0.0  ;;  %v105_v40 = vsel %vm69_vm0, %v198_v18, 0.0 }
  0x17   :  { %v101_v39 = vsel %vm69_vm0, %v59_v34, 0.0  ;;  %v106_v41 = vsel %vm69_vm0, %v60_v35, 0.0  ;;  %v231_v44 = vmov 0.0   ;;  %v119_v46 = vand.u32 127, %v118_v45 }
  0x18   :  { %v102_v42 = vadd.f32 %v101_v39, %v100_v38  ;;  %v107_v43 = vadd.f32 %v106_v41, %v105_v40  ;;  %27 = vst.msk [vmem:[#allocation2] sm:$0xff] %vm26_vm1, %v231_v44  ;;  %v121_v47 = vshrl.u32 %v118_v45, 7  ;;  %vm152_vm2 = vcmask 1041409  }
  0x19   :  { %78 = vadd.xlane.f32.xlu0 %v77_v28  ;;  %88 = vadd.xlane.f32.xlu1 %v87_v29  ;;  %vm154_vm3 = vcmask 1042434   ;;  %vm156_vm4 = vcmask 1043459   ;;  %vm158_vm5 = vcmask 1044484   ;;  %vm160_vm6 = vcmask 1045509  }
  0x1a   :  { %v122_v50 = vsub.s32 %v119_v46, %v121_v47  ;;  %vm162_vm7 = vcmask 1046534   ;;  %vm164_vm8 = vcmask 1047559   ;;  %vm176_vm9 = vcmask 27648  }
  0x1d   :  { %93 = vadd.xlane.f32.xlu0 %v92_v36  ;;  %98 = vadd.xlane.f32.xlu1 %v97_v37 }
  0x1f   :  { %v28_v6 = vld [vmem:[#allocation2] sm:$0xff] }
  0x21   :  { %103 = vadd.xlane.f32.xlu0 %v102_v42  ;;  %108 = vadd.xlane.f32.xlu1 %v107_v43 }
  0x9e   :  { %v74_v48 = vpop.xlane.xlu0 %73  ;;  %v84_v49 = vpop.xlane.xlu1 %83 }
  0x9f   :  { %v123_v53 = vrot.slane %v74_v48, %v122_v50  ;;  %v131_v56 = vrot.slane %v84_v49, %v122_v50 }
  0xa2   :  { %v79_v51 = vpop.xlane.xlu0 %78  ;;  %v89_v52 = vpop.xlane.xlu1 %88 }
  0xa3   :  { %v127_v54 = vrot.slane %v79_v51, %v122_v50  ;;  %v135_v55 = vrot.slane %v89_v52, %v122_v50 }
  0xa5   :  { %v153_v57 = vsel %vm152_vm2, %v127_v54, %v123_v53 }
  0xa6   :  { %v155_v58 = vsel %vm154_vm3, %v131_v56, %v153_v57  ;;  %v94_v59 = vpop.xlane.xlu0 %93  ;;  %v99_v60 = vpop.xlane.xlu1 %98 }
  0xa7   :  { %v157_v61 = vsel %vm156_vm4, %v135_v55, %v155_v58  ;;  %v139_v62 = vrot.slane %v94_v59, %v122_v50  ;;  %v143_v63 = vrot.slane %v99_v60, %v122_v50 }
  0xa9   :  { %v159_v0 = vsel %vm158_vm5, %v139_v62, %v157_v61 }
  0xaa   :  { %v104_v1 = vpop.xlane.xlu0 %103  ;;  %v109_v2 = vpop.xlane.xlu1 %108  ;;  %v161_v5 = vsel %vm160_vm6, %v143_v63, %v159_v0 }
  0xab   :  { %v147_v3 = vrot.slane %v104_v1, %v122_v50  ;;  %v151_v4 = vrot.slane %v109_v2, %v122_v50 }
  0xad   :  { %v163_v7 = vsel %vm162_vm7, %v147_v3, %v161_v5 }
  0xae   :  { %v165_v8 = vsel %vm164_vm8, %v151_v4, %v163_v7 }
  0xaf   :  { %v167_v9 = vadd.f32 %v165_v8, %v28_v6 }
  0xb1   :  { %169 = vst.msk [vmem:[#allocation2] sm:$0xff] %vm26_vm1, %v167_v9 }
  0xb8   :  { %v173_v10 = vld [vmem:[#allocation2] sm:$0xff] }
  0xb9   :  { %v174_v11 = vmul.f32 0.00390625, %v173_v10 }
  0xbb   :  { %v175_v12 = vpack.c.bf16 %v174_v11, %v174_v11 }
  0xbd   :  { %177 = vst.msk [vmem:[%s267_s1] sm:$0xf] %vm176_vm9, %v175_v12 }
  0xbe   :  { %182 = vsyncpa [#allocation4], 1 }

</bundles_post_ra>
